<compile_context>
chip_gen: v7x
topology: tpu7x:2x2x1
jax: 0.10.0
libtpu: 0.0.40
codegen_flags: <defaults>
</compile_context>

<pallas_src>
import functools
import math

import jax
import jax.numpy as jnp
from jax import lax
from jax.experimental import pallas as pl
from jax.experimental.pallas import tpu as pltpu

_LANE = 128
_SPLIT_THRESHOLD = 512      # force >=2 batch tiles once B reaches this (v7x megacore)


def _round_up(x, m):
    return ((x + m - 1) // m) * m


def _choose_batch_tile(B, block_b):
    """Pick the batch tile: multiple of 8 (or the full batch), >=2 tiles for big B."""
    tb = max(8, _round_up(int(block_b), 8))
    if B >= _SPLIT_THRESHOLD:
        # Keep the batch grid at >=2 tiles so the "parallel" axis shards across both
        # TensorCores on v7x; costs one extra ~0.35us grid step on 1-TC chips.
        tb = min(tb, _round_up(pl.cdiv(B, 2), 8))
    if tb >= B:
        return B            # single full-extent block: exempt from (8,128) alignment
    return tb


# ---------------------------------------------------------------------------
# Kernel
# ---------------------------------------------------------------------------
def _critic_kernel(s_ref, a_ref, w1s_ref, w1a_ref, b1_ref, w2_ref, b2_ref,
                   w3_ref, b3_ref, o_ref, *, lane_dense_out):
    cdt = w2_ref.dtype          # matmul operand dtype: f32 (exact) or bf16 (fast path)

    # Layer 1: fused "concat" via split weight:  [s a] @ [[W1s],[W1a]] = s@W1s + a@W1a
    h1 = (jnp.dot(s_ref[...].astype(cdt), w1s_ref[...],
                  preferred_element_type=jnp.float32)
          + jnp.dot(a_ref[...].astype(cdt), w1a_ref[...],
                    preferred_element_type=jnp.float32)
          + b1_ref[...])
    h1 = jnp.maximum(h1, 0.0)

    # Layer 2 (dominant matmul, K = F_pad = lane-padded hidden width)
    h2 = jnp.dot(h1.astype(cdt), w2_ref[...],
                 preferred_element_type=jnp.float32) + b2_ref[...]
    h2 = jnp.maximum(h2, 0.0)

    # Layer 3
    if lane_dense_out:
        # n_output == 1: contract the feature dim of w3 (1, F) with the feature dim
        # of h2 (TB, F) -> (1, TB).  The batch dim lands on lanes, so the store is an
        # unmasked full-lane vst and the write-back DMA is contiguous.  Each result
        # column depends only on the matching h2 row, so garbage tail rows (partial
        # input blocks) stay confined to output positions that are never read.
        q = lax.dot_general(w3_ref[...], h2.astype(cdt),
                            dimension_numbers=(((1,), (1,)), ((), ())),
                            preferred_element_type=jnp.float32)
        o_ref[...] = q + b3_ref[...]            # (1, TB) + (1, 1)
    else:
        q = jnp.dot(h2.astype(cdt), w3_ref[...],
                    preferred_element_type=jnp.float32)
        o_ref[...] = q + b3_ref[...]            # (TB, n_out) + (1, n_out)


def critic_mlp_pallas(state, action, w1_s, w1_a, b1, w2, b2, w3, b3,
                      *, lane_dense_out, block_b=1024,
                      vmem_limit_bytes=32 * 1024 * 1024):
    """3-layer critic MLP in one Pallas kernel, tiled over the batch dimension."""
    B, ds = state.shape
    da = action.shape[1]
    n_out = b3.shape[1]
    if lane_dense_out:
        assert n_out == 1, "lane_dense_out requires n_output == 1"

    TB = _choose_batch_tile(B, block_b)
    n_tiles = pl.cdiv(B, TB)

    # Weights/biases: constant index_map -> fetched once, VMEM-resident across grid.
    def resident(arr):
        nd = arr.ndim
        return pl.BlockSpec(arr.shape, lambda i, _nd=nd: (0,) * _nd)

    in_specs = [
        pl.BlockSpec((TB, ds), lambda i: (i, 0)),     # state tile
        pl.BlockSpec((TB, da), lambda i: (i, 0)),     # action tile
        resident(w1_s), resident(w1_a), resident(b1),
        resident(w2), resident(b2),
        resident(w3), resident(b3),
    ]

    if lane_dense_out:
        # One (1, TB) lane-dense row per grid step; last two block dims equal the
        # full array dims, leading tile index is squeezed out of the kernel ref.
        out_shape = jax.ShapeDtypeStruct((n_tiles, 1, TB), jnp.float32)
        out_specs = pl.BlockSpec((None, 1, TB), lambda i: (i, 0, 0))
    else:
        out_shape = jax.ShapeDtypeStruct((B, n_out), jnp.float32)
        out_specs = pl.BlockSpec((TB, n_out), lambda i: (i, 0))

    grid_spec = pltpu.PrefetchScalarGridSpec(
        num_scalar_prefetch=0,
        grid=(n_tiles,),
        in_specs=in_specs,
        out_specs=out_specs,
    )

    out = pl.pallas_call(
        functools.partial(_critic_kernel, lane_dense_out=lane_dense_out),
        out_shape=out_shape,
        grid_spec=grid_spec,
        compiler_params=pltpu.CompilerParams(
            dimension_semantics=("parallel",),        # batch tiles are independent
            vmem_limit_bytes=vmem_limit_bytes),
    )(state, action, w1_s, w1_a, b1, w2, b2, w3, b3)

    if lane_dense_out:
        # (n_tiles, 1, TB) -> flat -> strip tail-tile padding -> (B, 1)
        return out.reshape(-1)[:B].reshape(B, 1)
    return out


# ---------------------------------------------------------------------------
# Parameter init (deterministic, mirroring the PyTorch __init__ semantics).
# Weights are stored as (in_features, out_features) = transpose of nn.Linear.
# Hidden feature dim is zero-padded to a multiple of 128 lanes (exact math).
# ---------------------------------------------------------------------------
def _xavier_uniform(key, fan_in, fan_out, gain):
    bound = gain * math.sqrt(6.0 / (fan_in + fan_out))
    return jax.random.uniform(key, (fan_in, fan_out), jnp.float32, -bound, bound)


def _linear_bias(key, fan_in, fan_out):
    bound = 1.0 / math.sqrt(fan_in)     # nn.Linear default bias init
    return jax.random.uniform(key, (1, fan_out), jnp.float32, -bound, bound)


def _pad2(w, rows, cols):
    return jnp.pad(w, ((0, rows - w.shape[0]), (0, cols - w.shape[1])))


class CriticNetworkPallas:
    def __init__(self, input_shape, output_shape, n_features,
                 agent_idx=-1, ma_critic=False, key=None,
                 use_bf16=False, block_b=1024):
        n_input = input_shape[-1]
        n_output = output_shape[0]
        self._agent_idx = agent_idx if not ma_critic else -1
        self._ma_critic = ma_critic
        self.n_output = n_output
        self._block_b = block_b
        # bf16 MXU fast path (f32 accumulate).  Default False keeps exact f32
        # forward semantics of the PyTorch module.
        self._wdtype = jnp.bfloat16 if use_bf16 else jnp.float32

        F = n_features
        F_p = _round_up(F, _LANE)       # pad hidden width to full 128-lane vregs
        self._n_features = F
        self._n_features_padded = F_p

        if key is None:
            key = jax.random.PRNGKey(0)
        ks = jax.random.split(key, 6)
        gain_relu = math.sqrt(2.0)      # nn.init.calculate_gain('relu')
        gain_lin = 1.0                  # nn.init.calculate_gain('linear')

        w1 = _xavier_uniform(ks[0], n_input, F, gain_relu)
        b1 = _linear_bias(ks[1], n_input, F)
        w2 = _xavier_uniform(ks[2], F, F, gain_relu)
        b2 = _linear_bias(ks[3], F, F)
        w3 = _xavier_uniform(ks[4], F, n_output, gain_lin)
        b3 = _linear_bias(ks[5], F, n_output)

        self.w1 = _pad2(w1, n_input, F_p).astype(self._wdtype)   # (n_input, F_p)
        self.b1 = _pad2(b1, 1, F_p)                              # (1, F_p)  f32
        self.w2 = _pad2(w2, F_p, F_p).astype(self._wdtype)       # (F_p, F_p)
        self.b2 = _pad2(b2, 1, F_p)                              # (1, F_p)  f32
        if n_output == 1:
            self.w3 = _pad2(w3.T, 1, F_p).astype(self._wdtype)   # (1, F_p)  lane-dense path
        else:
            self.w3 = _pad2(w3, F_p, n_output).astype(self._wdtype)  # (F_p, n_out)
        self.b3 = b3                                             # (1, n_out) f32

        self._w1_split = {}     # cache of (w1_s, w1_a) keyed by state feature dim

    def _split_w1(self, ds):
        # Hoisted out of the per-call hot path: sliced once per state dim, reused.
        if ds not in self._w1_split:
            self._w1_split[ds] = (self.w1[:ds, :], self.w1[ds:, :])
        return self._w1_split[ds]

    def __call__(self, state, action):
        if self._agent_idx != -1:
            if state.ndim == 3:
                state = state[:, self._agent_idx, :]
        if action.ndim == 3:
            if not self._ma_critic:
                action = action[:, self._agent_idx, :]
            else:
                # Faithful to torch.squeeze (drops ALL size-1 dims, incl. batch == 1).
                action = jnp.squeeze(action)

        state = state.astype(jnp.float32)
        action = action.astype(jnp.float32)

        w1_s, w1_a = self._split_w1(state.shape[-1])
        q = critic_mlp_pallas(state, action, w1_s, w1_a, self.b1,
                              self.w2, self.b2, self.w3, self.b3,
                              lane_dense_out=(self.n_output == 1),
                              block_b=self._block_b)
        return jnp.squeeze(q)


# ---------------------------------------------------------------------------
# Pure-JAX reference for correctness checking.
# ---------------------------------------------------------------------------
def _reference(net, state, action):
    if net._agent_idx != -1 and state.ndim == 3:
        state = state[:, net._agent_idx, :]
    if action.ndim == 3:
        if not net._ma_critic:
            action = action[:, net._agent_idx, :]
        else:
            action = jnp.squeeze(action)
    dot = lambda a, b: jnp.dot(a, b, precision=lax.Precision.HIGHEST)
    x = jnp.concatenate((state.astype(jnp.float32),
                         action.astype(jnp.float32)), axis=-1)
    w1 = net.w1.astype(jnp.float32)
    w2 = net.w2.astype(jnp.float32)
    w3 = net.w3.astype(jnp.float32)
    h1 = jnp.maximum(dot(x, w1) + net.b1, 0.0)
    h2 = jnp.maximum(dot(h1, w2) + net.b2, 0.0)
    if net.n_output == 1:
        q = dot(h2, w3.T) + net.b3
    else:
        q = dot(h2, w3) + net.b3
    return jnp.squeeze(q)


if __name__ == "__main__":
    key = jax.random.PRNGKey(0)
    k_state, k_action, k_params, k_s2, k_a2, k_s3, k_a3 = jax.random.split(key, 7)

    batch = 8
    n_agents = 3
    state_dim = 12
    action_dim = 4
    n_features = 32
    agent_idx = 1

    # --- Test 1: 3-D (batch, n_agents, dim) inputs exercise the agent-slicing path,
    # single full-extent batch tile, lane-dense n_output==1 output, exact f32 math.
    state = jax.random.normal(k_state, (batch, n_agents, state_dim), jnp.float32)
    action = jax.random.normal(k_action, (batch, n_agents, action_dim), jnp.float32)

    net = CriticNetworkPallas(
        input_shape=(state_dim + action_dim,), output_shape=(1,),
        n_features=n_features, agent_idx=agent_idx, ma_critic=False, key=k_params)

    q = jax.block_until_ready(net(state, action))
    q_ref = _reference(net, state, action)
    assert q.shape == (batch,), q.shape
    assert jnp.allclose(q, q_ref, atol=1e-4, rtol=1e-4), "mismatch (3-D path)"

    # --- Test 2: B=520 >= split threshold -> 2 batch tiles (v7x megacore path),
    # partial tail block (no wrapper-side padding), lane-dense output stripping.
    state_b = jax.random.normal(k_s2, (520, state_dim), jnp.float32)
    action_b = jax.random.normal(k_a2, (520, action_dim), jnp.float32)
    q_b = jax.block_until_ready(net(state_b, action_b))
    q_b_ref = _reference(net, state_b, action_b)
    assert q_b.shape == (520,), q_b.shape
    assert jnp.allclose(q_b, q_b_ref, atol=1e-4, rtol=1e-4), "mismatch (split-tile path)"

    # --- Test 3: tiny block_b forces a 3-tile grid with an 8-row partial tail.
    w1_s, w1_a = net._split_w1(state_dim)
    state_t = jax.random.normal(k_s3, (40, state_dim), jnp.float32)
    action_t = jax.random.normal(k_a3, (40, action_dim), jnp.float32)
    q_t = critic_mlp_pallas(state_t, action_t, w1_s, w1_a, net.b1,
                            net.w2, net.b2, net.w3, net.b3,
                            lane_dense_out=True, block_b=16)
    q_t = jax.block_until_ready(q_t)
    q_t_ref = _reference(net, state_t, action_t)
    assert jnp.allclose(jnp.squeeze(q_t), q_t_ref, atol=1e-4, rtol=1e-4), \
        "mismatch (multi-tile path)"

    # --- Test 4: n_output > 1 exercises the (TB, n_out) matmul output path.
    net3 = CriticNetworkPallas(
        input_shape=(state_dim + action_dim,), output_shape=(3,),
        n_features=n_features, key=k_params)
    q3 = jax.block_until_ready(net3(state_t, action_t))
    q3_ref = _reference(net3, state_t, action_t)
    assert q3.shape == (40, 3), q3.shape
    assert jnp.allclose(q3, q3_ref, atol=1e-4, rtol=1e-4), "mismatch (n_out>1 path)"

    # --- Test 5: bf16 MXU fast path (f32 accumulate); looser tolerance by design.
    net_bf = CriticNetworkPallas(
        input_shape=(state_dim + action_dim,), output_shape=(1,),
        n_features=n_features, agent_idx=agent_idx, ma_critic=False,
        key=k_params, use_bf16=True)
    q_bf = jax.block_until_ready(net_bf(state, action))
    q_bf_ref = _reference(net_bf, state, action)
    assert jnp.allclose(q_bf, q_bf_ref, atol=3e-2, rtol=3e-2), "mismatch (bf16 path)"

    print("KERNEL_OK")
</pallas_src>

<mosaic_0001>
module attributes {stable_mosaic.version = 11 : i64} {
  func.func @_critic_kernel(%arg0: i32, %arg1: memref<8x12xf32, #tpu.memory_space<vmem>>, %arg2: memref<8x4xf32, #tpu.memory_space<vmem>>, %arg3: memref<12x128xf32, #tpu.memory_space<vmem>>, %arg4: memref<4x128xf32, #tpu.memory_space<vmem>>, %arg5: memref<1x128xf32, #tpu.memory_space<vmem>>, %arg6: memref<128x128xf32, #tpu.memory_space<vmem>>, %arg7: memref<1x128xf32, #tpu.memory_space<vmem>>, %arg8: memref<1x128xf32, #tpu.memory_space<vmem>>, %arg9: memref<1x1xf32, #tpu.memory_space<vmem>>, %arg10: memref<1x1x8xf32, #tpu.memory_space<vmem>>) attributes {dimension_semantics = [#tpu.dimension_semantics<parallel>], iteration_bounds = array<i64: 1>, scalar_prefetch = 0 : i64, scratch_operands = 0 : i64, tpu.core_type = #tpu.core_type<tc>, window_params = [{transform_indices = @transform_0, window_bounds = array<i64: 8, 12>}, {transform_indices = @transform_1, window_bounds = array<i64: 8, 4>}, {pipeline_mode = #tpu.pipeline_mode<synchronous>, transform_indices = @transform_2, window_bounds = array<i64: 12, 128>}, {pipeline_mode = #tpu.pipeline_mode<synchronous>, transform_indices = @transform_3, window_bounds = array<i64: 4, 128>}, {pipeline_mode = #tpu.pipeline_mode<synchronous>, transform_indices = @transform_4, window_bounds = array<i64: 1, 128>}, {pipeline_mode = #tpu.pipeline_mode<synchronous>, transform_indices = @transform_5, window_bounds = array<i64: 128, 128>}, {pipeline_mode = #tpu.pipeline_mode<synchronous>, transform_indices = @transform_6, window_bounds = array<i64: 1, 128>}, {pipeline_mode = #tpu.pipeline_mode<synchronous>, transform_indices = @transform_7, window_bounds = array<i64: 1, 128>}, {pipeline_mode = #tpu.pipeline_mode<synchronous>, transform_indices = @transform_8, window_bounds = array<i64: 1, 1>}, {transform_indices = @transform_9, window_bounds = array<i64: 1, 1, 8>}]} {
    %c0 = arith.constant 0 : index
    %c0_0 = arith.constant 0 : index
    %0 = vector.load %arg1[%c0, %c0_0] : memref<8x12xf32, #tpu.memory_space<vmem>>, vector<8x12xf32>
    %c0_1 = arith.constant 0 : index
    %c0_2 = arith.constant 0 : index
    %1 = vector.load %arg3[%c0_1, %c0_2] : memref<12x128xf32, #tpu.memory_space<vmem>>, vector<12x128xf32>
    %cst = arith.constant dense<0.000000e+00> : vector<8x128xf32>
    %2 = tpu.matmul %0, %1, %cst {dimension_numbers = #tpu.dot_dimension_numbers<[1], [0], [0], [1], [0, 0, 1, 1], [], []>} : vector<8x12xf32>, vector<12x128xf32>, vector<8x128xf32> -> vector<8x128xf32>
    %c0_3 = arith.constant 0 : index
    %c0_4 = arith.constant 0 : index
    %3 = vector.load %arg2[%c0_3, %c0_4] : memref<8x4xf32, #tpu.memory_space<vmem>>, vector<8x4xf32>
    %c0_5 = arith.constant 0 : index
    %c0_6 = arith.constant 0 : index
    %4 = vector.load %arg4[%c0_5, %c0_6] : memref<4x128xf32, #tpu.memory_space<vmem>>, vector<4x128xf32>
    %cst_7 = arith.constant dense<0.000000e+00> : vector<8x128xf32>
    %5 = tpu.matmul %3, %4, %cst_7 {dimension_numbers = #tpu.dot_dimension_numbers<[1], [0], [0], [1], [0, 0, 1, 1], [], []>} : vector<8x4xf32>, vector<4x128xf32>, vector<8x128xf32> -> vector<8x128xf32>
    %6 = arith.addf %2, %5 : vector<8x128xf32>
    %c0_8 = arith.constant 0 : index
    %c0_9 = arith.constant 0 : index
    %7 = vector.load %arg5[%c0_8, %c0_9] : memref<1x128xf32, #tpu.memory_space<vmem>>, vector<1x128xf32>
    %8 = vector.broadcast %7 : vector<1x128xf32> to vector<8x128xf32>
    %9 = arith.addf %6, %8 : vector<8x128xf32>
    %cst_10 = arith.constant 0.000000e+00 : f32
    %10 = vector.broadcast %cst_10 : f32 to vector<8x128xf32>
    %11 = arith.maximumf %9, %10 : vector<8x128xf32>
    %c0_11 = arith.constant 0 : index
    %c0_12 = arith.constant 0 : index
    %12 = vector.load %arg6[%c0_11, %c0_12] : memref<128x128xf32, #tpu.memory_space<vmem>>, vector<128x128xf32>
    %cst_13 = arith.constant dense<0.000000e+00> : vector<8x128xf32>
    %13 = tpu.matmul %11, %12, %cst_13 {dimension_numbers = #tpu.dot_dimension_numbers<[1], [0], [0], [1], [0, 0, 1, 1], [], []>} : vector<8x128xf32>, vector<128x128xf32>, vector<8x128xf32> -> vector<8x128xf32>
    %c0_14 = arith.constant 0 : index
    %c0_15 = arith.constant 0 : index
    %14 = vector.load %arg7[%c0_14, %c0_15] : memref<1x128xf32, #tpu.memory_space<vmem>>, vector<1x128xf32>
    %15 = vector.broadcast %14 : vector<1x128xf32> to vector<8x128xf32>
    %16 = arith.addf %13, %15 : vector<8x128xf32>
    %cst_16 = arith.constant 0.000000e+00 : f32
    %17 = vector.broadcast %cst_16 : f32 to vector<8x128xf32>
    %18 = arith.maximumf %16, %17 : vector<8x128xf32>
    %c0_17 = arith.constant 0 : index
    %c0_18 = arith.constant 0 : index
    %19 = vector.load %arg8[%c0_17, %c0_18] : memref<1x128xf32, #tpu.memory_space<vmem>>, vector<1x128xf32>
    %cst_19 = arith.constant dense<0.000000e+00> : vector<1x8xf32>
    %20 = tpu.matmul %19, %18, %cst_19 {dimension_numbers = #tpu.dot_dimension_numbers<[1], [1], [0], [0], [0, 0, 1, 0], [], []>} : vector<1x128xf32>, vector<8x128xf32>, vector<1x8xf32> -> vector<1x8xf32>
    %c0_20 = arith.constant 0 : index
    %c0_21 = arith.constant 0 : index
    %21 = vector.load %arg9[%c0_20, %c0_21] : memref<1x1xf32, #tpu.memory_space<vmem>>, vector<1x1xf32>
    %22 = vector.broadcast %21 : vector<1x1xf32> to vector<1x8xf32>
    %23 = arith.addf %20, %22 : vector<1x8xf32>
    %c0_22 = arith.constant 0 : index
    %c0_23 = arith.constant 0 : index
    %c0_24 = arith.constant 0 : index
    %24 = vector.load %arg10[%c0_22, %c0_23, %c0_24] : memref<1x1x8xf32, #tpu.memory_space<vmem>>, vector<1x1x8xf32>
    %25 = vector.shape_cast %24 : vector<1x1x8xf32> to vector<1x8xf32>
    %26 = vector.shape_cast %23 : vector<1x8xf32> to vector<1x1x8xf32>
    tpu.vector_store %arg10[%c0_22, %c0_23, %c0_24], %26 {strides = array<i32>} : memref<1x1x8xf32, #tpu.memory_space<vmem>>, vector<1x1x8xf32>,
    return
  }
  func.func @transform_0(%arg0: i32) -> (i32, i32) {
    %c0_i32 = arith.constant 0 : i32
    %c0_i32_0 = arith.constant 0 : i32
    return %arg0, %c0_i32 : i32, i32
  }
  func.func @transform_1(%arg0: i32) -> (i32, i32) {
    %c0_i32 = arith.constant 0 : i32
    %c0_i32_0 = arith.constant 0 : i32
    return %arg0, %c0_i32 : i32, i32
  }
  func.func @transform_2(%arg0: i32) -> (i32, i32) {
    %c0_i32 = arith.constant 0 : i32
    %c0_i32_0 = arith.constant 0 : i32
    %c0_i32_1 = arith.constant 0 : i32
    return %c0_i32, %c0_i32_0 : i32, i32
  }
  func.func @transform_3(%arg0: i32) -> (i32, i32) {
    %c0_i32 = arith.constant 0 : i32
    %c0_i32_0 = arith.constant 0 : i32
    %c0_i32_1 = arith.constant 0 : i32
    return %c0_i32, %c0_i32_0 : i32, i32
  }
  func.func @transform_4(%arg0: i32) -> (i32, i32) {
    %c0_i32 = arith.constant 0 : i32
    %c0_i32_0 = arith.constant 0 : i32
    %c0_i32_1 = arith.constant 0 : i32
    return %c0_i32, %c0_i32_0 : i32, i32
  }
  func.func @transform_5(%arg0: i32) -> (i32, i32) {
    %c0_i32 = arith.constant 0 : i32
    %c0_i32_0 = arith.constant 0 : i32
    %c0_i32_1 = arith.constant 0 : i32
    return %c0_i32, %c0_i32_0 : i32, i32
  }
  func.func @transform_6(%arg0: i32) -> (i32, i32) {
    %c0_i32 = arith.constant 0 : i32
    %c0_i32_0 = arith.constant 0 : i32
    %c0_i32_1 = arith.constant 0 : i32
    return %c0_i32, %c0_i32_0 : i32, i32
  }
  func.func @transform_7(%arg0: i32) -> (i32, i32) {
    %c0_i32 = arith.constant 0 : i32
    %c0_i32_0 = arith.constant 0 : i32
    %c0_i32_1 = arith.constant 0 : i32
    return %c0_i32, %c0_i32_0 : i32, i32
  }
  func.func @transform_8(%arg0: i32) -> (i32, i32) {
    %c0_i32 = arith.constant 0 : i32
    %c0_i32_0 = arith.constant 0 : i32
    %c0_i32_1 = arith.constant 0 : i32
    return %c0_i32, %c0_i32_0 : i32, i32
  }
  func.func @transform_9(%arg0: i32) -> (i32, i32, i32) {
    %c0_i32 = arith.constant 0 : i32
    %c0_i32_0 = arith.constant 0 : i32
    %c0_i32_1 = arith.constant 0 : i32
    return %arg0, %c0_i32, %c0_i32_0 : i32, i32, i32
  }
}

</mosaic_0001>

<bundles_post_ra>
// kernel: tpu_custom_call.1
= control target key start
LH: loop header
LB: loop body
LE: loop exit
PB: predicated region body
PF: predicated region fallthrough
CT: control target
= control target key end

     0   :  { %s747_s0 = inlined_call_operand.hbm [shape: f32[8,12], index: 0, kind: input, shape index: {}]   ;;  %s748_s1 = inlined_call_operand.vmem [shape: f32[8,4], index: 1, kind: input, shape index: {}]   ;;  %s749_s2 = inlined_call_operand.vmem [shape: f32[12,128], index: 2, kind: input, shape index: {}]   ;;  %s750_s3 = inlined_call_operand.vmem [shape: f32[4,128], index: 3, kind: input, shape index: {}]   ;;  %s751_s4 = inlined_call_operand.vmem [shape: f32[1,128], index: 4, kind: input, shape index: {}]   ;;  %s752_s5 = inlined_call_operand.hbm [shape: f32[128,128], index: 5, kind: input, shape index: {}]   ;;  %s753_s6 = inlined_call_operand.vmem [shape: f32[1,128], index: 6, kind: input, shape index: {}]   ;;  %s754_s7 = inlined_call_operand.vmem [shape: f32[1,128], index: 7, kind: input, shape index: {}]   ;;  %s755_s8 = inlined_call_operand.<no memory space> [shape: f32[1,1], index: 8, kind: input, shape index: {}]   ;;  %s756_s9 = inlined_call_operand.hbm [shape: f32[1,1,8], index: 9, kind: output, shape index: {}]  }
   0x1   :  { %v14_v0 = vstv %s755_s8 }
   0x2   :  { %15 = vst [vmem:[#allocation2] sm:$0x1] %v14_v0 }
   0x3   :  { %16 = vsyncpa [#allocation4], 0 }
   0x4   :  { %17 = vsyncpa [#allocation7], 0 }
   0x5   :  { %18 = vsyncpa [#allocation5], 0  ;;  %s616_s11 = smov [#allocation3]   ;;  %s617_s13 = smov [#allocation6]  }
   0x6   :  { %s25_s12 = sshll.u32 %s616_s11, 4  ;;  %s42_s14 = sshll.u32 %s617_s13, 4  ;;  %s26_s12 = int_to_ptr.vmem [resolvable:$true] %s25_s12  ;;  %s679_s14 = int_to_ptr.vmem [resolvable:$true] %s42_s14 }
   0x7   :  { %s544_s17 = scalar_lea.hbm %s747_s0, 128 }
   0x8   :  { %p545_p0 = scmp.ne.s32.totalorder %s747_s0, %s544_s17  ;;  %p548_p1 = scmp.lt.u32.totalorder %s544_s17, %s747_s0 }
   0xa   :  { %p550_p2 = pnand %p548_p1, %p545_p0 }
   0xc   :  { %553 = shalt.err (!%p550_p2)
}
   0xd   :  { %s554_s21 = scalar_lea.vmem %s26_s12, 128  ;;  %p559_p4 = scmp.lt.s32.totalorder %s26_s12, %s26_s12 }
   0xe   :  { %p555_p3 = scmp.ne.s32.totalorder %s26_s12, %s554_s21  ;;  %p560_p5 = scmp.lt.s32.totalorder %s554_s21, %s554_s21 }
  0x10   :  { %p561_p6 = por %p560_p5, %p559_p4 }
  0x12   :  { %p562_p7 = pnand %p561_p6, %p555_p3 }
  0x14   :  { %565 = shalt.err (!%p562_p7)
}
  0x15   :  { %28 = dma.hbm_to_vmem [thread:$0]  %s747_s0, 128, %s26_s12, [#allocation4]  }
  0x16   :  { %s566_s26 = scalar_lea.hbm %s752_s5, 2048 }
  0x17   :  { %p567_p8 = scmp.ne.s32.totalorder %s752_s5, %s566_s26  ;;  %p570_p9 = scmp.lt.u32.totalorder %s566_s26, %s752_s5 }
  0x19   :  { %p572_p10 = pnand %p570_p9, %p567_p8 }
  0x1b   :  { %575 = shalt.err (!%p572_p10)
}
  0x1c   :  { %s576_s10 = scalar_lea.vmem %s679_s14, 2048  ;;  %p581_p12 = scmp.lt.s32.totalorder %s679_s14, %s679_s14 }
  0x1d   :  { %p577_p11 = scmp.ne.s32.totalorder %s679_s14, %s576_s10  ;;  %p582_p13 = scmp.lt.s32.totalorder %s576_s10, %s576_s10 }
  0x1f   :  { %p583_p0 = por %p582_p13, %p581_p12 }
  0x21   :  { %p584_p1 = pnand %p583_p0, %p577_p11 }
  0x23   :  { %587 = shalt.err (!%p584_p1)
}
  0x24   :  { %s618_s0 = smov 128   ;;  %s619_s11 = smov 8  }
  0x25   :  { %48 = dma.hbm_to_vmem [thread:$0]  %s752_s5, 2048, %s679_s14, [#allocation7], %s618_s0, %s618_s0, %s619_s11  }
  0x26   :  { %610 = dma.done.wait [#allocation4], 128  }
  0x27   :  { %611 = vsyncadd [#allocation4], 4294967168 }
  0x28   :  { %612 = dma.done.wait [#allocation7], 2048  }
  0x29   :  { %613 = vsyncadd [#allocation7], 4294965248  ;;  %v620_v1 = vmov 0.0   ;;  %vm621_vm0 = vmmov 0   ;;  %v622_v2 = vmov 0.0|0.0   ;;  %vm70_vm1 = vcmask 1043456  }
  0x2a   :  { %453 = vmatprep.subr.mxu1 %v620_v1  ;;  %455 = vmatprep.mubr.msk.f32.mxu1 %vm621_vm0, %v620_v1  ;;  %vm66_vm2 = vcmask 31744   ;;  %v65_v3 = vld [vmem:[%s750_s3] sm:$0xf]  ;;  %vm623_vm3 = vmmov 1   ;;  %v63_v6 = vld [vmem:[%s749_s2 + $0x8] sm:$0xf]  ;;  %v331_v49 = vlaneseq }
  0x2b   :  { %509 = vmatprep.subr.bf16.mxu0 %v622_v2  ;;  %497 = vmatprep.mubr.msk.f32.mxu0 %vm621_vm0, %v620_v1  ;;  %v64_v4 = vld [vmem:[%s748_s1] sm:$0xff]  ;;  %vm507_vm4 = vmpackc.low %vm70_vm1, %vm623_vm3  ;;  %v230_v7 = vld [vmem:[#allocation6] sm:$0xff]  ;;  %vm144_vm5 = vcmask 97280   ;;  %v624_v42 = vmov 0   ;;  %s625_s22 = smov [#allocation8]   ;;  %vm405_vm6 = vcmask 57344  }
  0x2c   :  { %v62_v5 = vld [vmem:[%s749_s2] sm:$0xff]  ;;  %454 = vmatpush3.msk.msra.mxu1 %vm70_vm1, %v65_v3  ;;  %v231_v9 = vld [vmem:[#allocation6 + $0x8] sm:$0xff]  ;;  %v234_v15 = vld [vmem:[#allocation6 + $0x20] sm:$0xff]  ;;  %543 = vset.pattern.permute.xlu0 %v624_v42  ;;  %v332_v50 = vshrl.u32 %v331_v49, 7  ;;  %s413_s23 = sshll.u32 %s625_s22, 4  ;;  %s414_s23 = int_to_ptr.vmem [resolvable:$true] %s413_s23 }
  0x2d   :  { %456 = vmatmul.mubr.msk.f32.vlgmr.msra.gmra.mrb[0].mxu1 %vm66_vm2, %v64_v4  ;;  %505 = vmatprep.subr.bf16.mxu1 %v622_v2  ;;  %v506_v8 = vpack.c.bf16 %v63_v6, %v62_v5  ;;  %v232_v10 = vld [vmem:[#allocation6 + $0x10] sm:$0xff]  ;;  %v233_v11 = vld [vmem:[#allocation6 + $0x18] sm:$0xff]  ;;  %v510_v12 = vpack.c.bf16 %v231_v9, %v230_v7  ;;  %v235_v16 = vld [vmem:[#allocation6 + $0x28] sm:$0xff]  ;;  %s592_s24 = scalar_lea.vmem %s414_s23, 32  ;;  %p593_p3 = scmp.lt.s32.totalorder %s414_s23, %s414_s23 }
  0x2e   :  { %462 = vmatprep.mubr.msk.f32.mxu1 %vm621_vm0, %v620_v1  ;;  %v61_v13 = vld [vmem:[#allocation3] sm:$0xff]  ;;  %v513_v14 = vpack.c.bf16 %v233_v11, %v232_v10  ;;  %v516_v17 = vpack.c.bf16 %v235_v16, %v234_v15  ;;  %v236_v18 = vld [vmem:[#allocation6 + $0x30] sm:$0xff]  ;;  %v238_v21 = vld [vmem:[#allocation6 + $0x40] sm:$0xff]  ;;  %v333_v51 = vsub.s32 0, %v332_v50 }
  0x2f   :  { %508 = vmatpush3.bf16.msk.msra.mxu1 %vm507_vm4, %v506_v8  ;;  %511 = vmatpush3.bf16.msra.mxu0 %v510_v12  ;;  %v237_v19 = vld [vmem:[#allocation6 + $0x38] sm:$0xff]  ;;  %v239_v22 = vld [vmem:[#allocation6 + $0x48] sm:$0xff]  ;;  %v240_v24 = vld [vmem:[#allocation6 + $0x50] sm:$0xff] }
  0x30   :  { %500 = vmatprep.subr.mxu1 %v620_v1  ;;  %512 = vmatprep.subr.bf16.mxu0 %v622_v2  ;;  %v519_v20 = vpack.c.bf16 %v237_v19, %v236_v18  ;;  %v522_v23 = vpack.c.bf16 %v239_v22, %v238_v21  ;;  %v241_v25 = vld [vmem:[#allocation6 + $0x58] sm:$0xff]  ;;  %v242_v27 = vld [vmem:[#allocation6 + $0x60] sm:$0xff]  ;;  %v243_v28 = vld [vmem:[#allocation6 + $0x68] sm:$0xff] }
  0x31   :  { %v525_v26 = vpack.c.bf16 %v241_v25, %v240_v24  ;;  %v528_v29 = vpack.c.bf16 %v243_v28, %v242_v27  ;;  %v244_v30 = vld [vmem:[#allocation6 + $0x70] sm:$0xff]  ;;  %v245_v31 = vld [vmem:[#allocation6 + $0x78] sm:$0xff] }
  0x32   :  { %463 = vmatmul.mubr.msk.f32.vlgmr.msra.gmra.mrb[2].mxu1 %vm144_vm5, %v61_v13  ;;  %v531_v32 = vpack.c.bf16 %v245_v31, %v244_v30  ;;  %v427_v36 = vld [vmem:[%s751_s4] ss:$0 sm:$0xff] }
  0x33   :  { %502 = vmatprep.mubr.msk.f32.mxu1 %vm621_vm0, %v620_v1  ;;  %514 = vmatpush3.bf16.msra.mxu0 %v513_v14  ;;  %v325_v41 = vld [vmem:[#allocation2] sm:$0x1] }
  0x34   :  { %515 = vmatprep.subr.bf16.mxu0 %v622_v2  ;;  %328 = vperm.xlu0 %543, %v325_v41   ;;  %v428_v43 = vld [vmem:[%s753_s6] ss:$0 sm:$0xff]  ;;  %s588_s6 = scalar_lea.vmem %s414_s23, 16 }
  0x35   :  { %v324_v48 = vld [vmem:[%s754_s7] sm:$0x1]  ;;  %p589_p2 = scmp.ne.s32.totalorder %s414_s23, %s588_s6  ;;  %p594_p4 = scmp.lt.s32.totalorder %s592_s24, %s588_s6 }
  0x37   :  { %517 = vmatpush3.bf16.msra.mxu0 %v516_v17  ;;  %p595_p5 = por %p594_p4, %p593_p3 }
  0x38   :  { %518 = vmatprep.subr.bf16.mxu0 %v622_v2 }
  0x39   :  { %p596_p6 = pnand %p595_p5, %p589_p2 }
  0x3b   :  { %520 = vmatpush3.bf16.msra.mxu0 %v519_v20 }
  0x3c   :  { %521 = vmatprep.subr.bf16.mxu0 %v622_v2 }
  0x3f   :  { %523 = vmatpush3.bf16.msra.mxu0 %v522_v23 }
  0x40   :  { %524 = vmatprep.subr.bf16.mxu0 %v622_v2 }
  0x43   :  { %526 = vmatpush3.bf16.msra.mxu0 %v525_v26 }
  0x44   :  { %527 = vmatprep.subr.bf16.mxu0 %v622_v2 }
  0x47   :  { %529 = vmatpush3.bf16.msra.mxu0 %v528_v29 }
  0x48   :  { %530 = vmatprep.subr.bf16.mxu0 %v622_v2 }
  0x4b   :  { %532 = vmatpush3.bf16.msra.mxu0 %v531_v32 }
  0xb3   :  { %v329_v52 = vpop.permute.xlu0 %328 }
  0xb4   :  { %v334_v53 = vrot.slane %v329_v52, %v333_v51 }
 0x100   :  { %v140_v33 = vpop.f32.mrb[0].mxu1 }
 0x101   :  { %v457_v34 = vpop.f32.mrb[1].mxu1 }
 0x105   :  { %v217_v35 = vpop.f32.mrb[2].mxu1 }
 0x106   :  { %v218_v37 = vadd.f32 %v217_v35, %v140_v33  ;;  %v464_v38 = vpop.f32.mrb[3].mxu1 }
 0x108   :  { %v228_v39 = vadd.f32 %v427_v36, %v218_v37 }
 0x10a   :  { %v229_v40 = vmax.f32 %v228_v39, 0.0 }
 0x10c   :  { %498 = vmatmul.mubr.f32.vlgmr.msra.gmra.mrb[0].mxu0 %v229_v40 }
 0x1df   :  { %v319_v44 = vpop.f32.mrb[0].mxu0 }
 0x1e0   :  { %v320_v45 = vadd.f32 %v428_v43, %v319_v44  ;;  %v499_v46 = vpop.f32.mrb[1].mxu0 }
 0x1e2   :  { %v323_v47 = vmax.f32 %v320_v45, 0.0 }
 0x1e4   :  { %501 = vmatpush3.xpose.msra.mxu1 %v323_v47 }
 0x1e7   :  { %503 = vmatmul.mubr.f32.vlgmr.msra.gmra.mrb[4].mxu1 %v324_v48 }
 0x2ba   :  { %v401_v54 = vpop.f32.mrb[4].mxu1 }
 0x2bb   :  { %v402_v55 = vadd.f32 %v401_v54, %v334_v53  ;;  %v504_v56 = vpop.f32.mrb[5].mxu1 }
 0x2bd   :  { %406 = vst.msk [vmem:[#allocation8] sm:$0x1] %vm405_vm6, %v402_v55 }
 0x2be   :  { %599 = shalt.err (!%p596_p6)
}
 0x2bf   :  { %s600_s26 = scalar_lea.hbm %s756_s9, 16 }
 0x2c0   :  { %p601_p7 = scmp.ne.s32.totalorder %s756_s9, %s600_s26  ;;  %p604_p8 = scmp.lt.u32.totalorder %s600_s26, %s756_s9 }
 0x2c2   :  { %p606_p9 = pnand %p604_p8, %p601_p7 }
 0x2c4   :  { %609 = shalt.err (!%p606_p9)
}
 0x2c5   :  { %416 = dma.vmem_to_hbm [thread:$0]  %s414_s23, 16, %s756_s9, [#allocation5]  }
 0x2c6   :  { %614 = dma.done.wait [#allocation5], 16  }
 0x2c7   :  { %615 = vsyncadd [#allocation5], 4294967280 }
 0x2c8   :  { %420 = vsyncpa [#allocation4], 1 }
 0x2c9   :  { %421 = vsyncpa [#allocation7], 1 }
 0x2ca   :  { %422 = vsyncpa [#allocation5], 1 }

</bundles_post_ra>
